<compile_context>
chip_gen: v7x
topology: tpu7x:2x2x1
jax: 0.10.0
libtpu: 0.0.40
codegen_flags: <defaults>
</compile_context>

<pallas_src>
import jax
import jax.numpy as jnp
from jax.experimental import pallas as pl
from jax.experimental.pallas import tpu as pltpu

HIDDEN = 128
LANE = 128
SUBLANE = 8


def _round_up(x, m):
    return ((x + m - 1) // m) * m


def classifier_kernel(x_ref, w1_ref, shift_ref, w2_ref, b2_ref, o_ref):
    # x_ref:     (TILE_N, dim_in)     bf16 tile of input rows
    # w1_ref:    (dim_in, 128)        bf16, BN scale folded in (resident)
    # shift_ref: (1, 128)             f32  = beta - running_mean * scale
    # w2_ref:    (128, dim_out_p)     bf16, columns zero-padded to 128k (resident)
    # b2_ref:    (1, dim_out_p)       f32, zero-padded
    # o_ref:     (TILE_N, dim_out_p)  f32, lane-dense
    x = x_ref[...]

    # linear1 (BN scale folded) on the MXU, f32 accumulate
    h = jnp.dot(x, w1_ref[...], preferred_element_type=jnp.float32)

    # BN shift + LeakyReLU(0.2) in f32 on the VPU
    h = h + shift_ref[...]
    h = jnp.where(h >= 0, h, 0.2 * h)

    # Dropout(p=0.5) -> identity at inference.

    # linear2 on the MXU (bf16 operands, f32 accumulate), bias added in f32
    h = h.astype(w2_ref.dtype)
    out = jnp.dot(h, w2_ref[...], preferred_element_type=jnp.float32)
    o_ref[...] = out + b2_ref[...]


def classifier_forward(x, params, *, vmem_budget_bytes=24 * 1024 * 1024):
    """x: (N, dim_in) float32.  params: dict from make_params (folded weights)."""
    n, dim_in = x.shape
    w1 = params["w1"]        # (dim_in, 128)      bf16
    shift = params["shift"]  # (1, 128)           f32
    w2 = params["w2"]        # (128, dim_out_p)   bf16
    b2 = params["b2"]        # (1, dim_out_p)     f32
    dim_out = params["dim_out"]
    dim_out_p = w2.shape[1]

    # --- pick TILE_N from the VMEM budget -------------------------------
    # double-buffered activations (bf16 x in, f32 padded out) + resident weights
    per_row = 2 * (dim_in * 2 + dim_out_p * 4)
    resident = w1.size * 2 + w2.size * 2 + (shift.size + b2.size) * 4
    tile_cap = max((vmem_budget_bytes - resident) // max(per_row, 1), SUBLANE)
    tile_cap = min(tile_cap, 8192)
    tile_n = int(min(_round_up(n, SUBLANE), (tile_cap // SUBLANE) * SUBLANE))
    tile_n = max(tile_n, SUBLANE)

    # --- pad N to a multiple of the tile so the last block is full ------
    n_pad = _round_up(n, tile_n)
    x_bf16 = x.astype(jnp.bfloat16)
    if n_pad != n:
        x_bf16 = jnp.pad(x_bf16, ((0, n_pad - n), (0, 0)))

    grid = (n_pad // tile_n,)

    out_padded = pl.pallas_call(
        classifier_kernel,
        out_shape=jax.ShapeDtypeStruct((n_pad, dim_out_p), jnp.float32),
        grid_spec=pltpu.PrefetchScalarGridSpec(
            num_scalar_prefetch=0,
            grid=grid,
            in_specs=[
                pl.BlockSpec((tile_n, dim_in), lambda i: (i, 0)),      # x tile
                pl.BlockSpec((dim_in, HIDDEN), lambda i: (0, 0)),      # w1 resident
                pl.BlockSpec((1, HIDDEN), lambda i: (0, 0)),           # shift resident
                pl.BlockSpec((HIDDEN, dim_out_p), lambda i: (0, 0)),   # w2 resident
                pl.BlockSpec((1, dim_out_p), lambda i: (0, 0)),        # b2 resident
            ],
            out_specs=pl.BlockSpec((tile_n, dim_out_p), lambda i: (i, 0)),
        ),
        compiler_params=pltpu.CompilerParams(
            dimension_semantics=("parallel",),
            vmem_limit_bytes=32 * 1024 * 1024,
        ),
    )(x_bf16, w1, shift, w2, b2)

    # strip row padding and lane padding
    return out_padded[:n, :dim_out]


def make_params(key, dim_in, dim_out, eps=1e-5):
    """Deterministic synthetic parameters (shapes per Classifier.__init__),
    pre-folded for the inference kernel."""
    ks = jax.random.split(key, 7)
    # nn.Linear(dim_in, 128, bias=False): weight (128, dim_in) -> stored transposed
    w1_t = jax.random.normal(ks[0], (dim_in, HIDDEN), jnp.float32) * 0.05
    # BatchNorm1d(128) parameters + running stats
    gamma = 1.0 + 0.1 * jax.random.normal(ks[1], (HIDDEN,), jnp.float32)
    beta = 0.1 * jax.random.normal(ks[2], (HIDDEN,), jnp.float32)
    running_mean = 0.1 * jax.random.normal(ks[3], (HIDDEN,), jnp.float32)
    running_var = 1.0 + 0.1 * jax.random.uniform(ks[4], (HIDDEN,), jnp.float32)
    # nn.Linear(128, dim_out): weight (dim_out, 128) -> stored transposed, bias (dim_out,)
    w2_t = jax.random.normal(ks[5], (HIDDEN, dim_out), jnp.float32) * 0.05
    b2 = 0.1 * jax.random.normal(ks[6], (dim_out,), jnp.float32)

    # Fold BN into linear1: y = (x @ w1) * scale + shift  ==  x @ (w1*scale) + shift
    scale = gamma / jnp.sqrt(running_var + eps)
    shift = beta - running_mean * scale
    w1_folded = w1_t * scale[None, :]

    # Pad dim_out up to a multiple of 128 so the kernel's output is lane-dense.
    dim_out_p = _round_up(dim_out, LANE)
    w2_p = jnp.zeros((HIDDEN, dim_out_p), jnp.float32).at[:, :dim_out].set(w2_t)
    b2_p = jnp.zeros((dim_out_p,), jnp.float32).at[:dim_out].set(b2)

    return {
        "w1": w1_folded.astype(jnp.bfloat16),
        "shift": shift.reshape(1, HIDDEN).astype(jnp.float32),
        "w2": w2_p.astype(jnp.bfloat16),
        "b2": b2_p.reshape(1, dim_out_p).astype(jnp.float32),
        "dim_out": dim_out,
    }


def reference_forward(x, params):
    """Pure-JAX reference doing the same bf16-operand / f32-accumulate math."""
    h = jnp.dot(x.astype(jnp.bfloat16), params["w1"],
                preferred_element_type=jnp.float32)
    h = h + params["shift"]
    h = jnp.where(h >= 0, h, 0.2 * h)
    out = jnp.dot(h.astype(jnp.bfloat16), params["w2"],
                  preferred_element_type=jnp.float32)
    out = out + params["b2"]
    return out[:, : params["dim_out"]]


if __name__ == "__main__":
    key = jax.random.PRNGKey(0)
    k_x, k_p = jax.random.split(key)

    N, DIM_IN, DIM_OUT = 8, 32, 16
    x = jax.random.normal(k_x, (N, DIM_IN), jnp.float32)
    params = make_params(k_p, DIM_IN, DIM_OUT)

    out = classifier_forward(x, params)
    out = jax.block_until_ready(out)

    ref = reference_forward(x, params)
    assert out.shape == (N, DIM_OUT)
    assert jnp.allclose(out, ref, atol=1e-3, rtol=1e-3)

    print("KERNEL_OK")
</pallas_src>

<mosaic_0001>
module attributes {stable_mosaic.version = 11 : i64} {
  func.func @classifier_kernel(%arg0: i32, %arg1: memref<8x32xbf16, #tpu.memory_space<vmem>>, %arg2: memref<32x128xbf16, #tpu.memory_space<vmem>>, %arg3: memref<1x128xf32, #tpu.memory_space<vmem>>, %arg4: memref<128x128xbf16, #tpu.memory_space<vmem>>, %arg5: memref<1x128xf32, #tpu.memory_space<vmem>>, %arg6: memref<8x128xf32, #tpu.memory_space<vmem>>) attributes {dimension_semantics = [#tpu.dimension_semantics<parallel>], iteration_bounds = array<i64: 1>, scalar_prefetch = 0 : i64, scratch_operands = 0 : i64, tpu.core_type = #tpu.core_type<tc>, window_params = [{transform_indices = @transform_0, window_bounds = array<i64: 8, 32>}, {pipeline_mode = #tpu.pipeline_mode<synchronous>, transform_indices = @transform_1, window_bounds = array<i64: 32, 128>}, {pipeline_mode = #tpu.pipeline_mode<synchronous>, transform_indices = @transform_2, window_bounds = array<i64: 1, 128>}, {pipeline_mode = #tpu.pipeline_mode<synchronous>, transform_indices = @transform_3, window_bounds = array<i64: 128, 128>}, {pipeline_mode = #tpu.pipeline_mode<synchronous>, transform_indices = @transform_4, window_bounds = array<i64: 1, 128>}, {transform_indices = @transform_5, window_bounds = array<i64: 8, 128>}]} {
    %c0 = arith.constant 0 : index
    %c0_0 = arith.constant 0 : index
    %0 = vector.load %arg1[%c0, %c0_0] : memref<8x32xbf16, #tpu.memory_space<vmem>>, vector<8x32xbf16>
    %c0_1 = arith.constant 0 : index
    %c0_2 = arith.constant 0 : index
    %1 = vector.load %arg2[%c0_1, %c0_2] : memref<32x128xbf16, #tpu.memory_space<vmem>>, vector<32x128xbf16>
    %cst = arith.constant dense<0.000000e+00> : vector<8x128xf32>
    %2 = tpu.matmul %0, %1, %cst {dimension_numbers = #tpu.dot_dimension_numbers<[1], [0], [0], [1], [0, 0, 1, 1], [], []>} : vector<8x32xbf16>, vector<32x128xbf16>, vector<8x128xf32> -> vector<8x128xf32>
    %c0_3 = arith.constant 0 : index
    %c0_4 = arith.constant 0 : index
    %3 = vector.load %arg3[%c0_3, %c0_4] : memref<1x128xf32, #tpu.memory_space<vmem>>, vector<1x128xf32>
    %4 = vector.broadcast %3 : vector<1x128xf32> to vector<8x128xf32>
    %5 = arith.addf %2, %4 : vector<8x128xf32>
    %cst_5 = arith.constant 0.000000e+00 : f32
    %6 = vector.broadcast %cst_5 : f32 to vector<8x128xf32>
    %7 = arith.cmpf oge, %5, %6 : vector<8x128xf32>
    %cst_6 = arith.constant 2.000000e-01 : f32
    %8 = vector.broadcast %cst_6 : f32 to vector<8x128xf32>
    %9 = arith.mulf %8, %5 : vector<8x128xf32>
    %10 = arith.select %7, %5, %9 : vector<8x128xi1>, vector<8x128xf32>
    %11 = arith.truncf %10 : vector<8x128xf32> to vector<8x128xbf16>
    %c0_7 = arith.constant 0 : index
    %c0_8 = arith.constant 0 : index
    %12 = vector.load %arg4[%c0_7, %c0_8] : memref<128x128xbf16, #tpu.memory_space<vmem>>, vector<128x128xbf16>
    %cst_9 = arith.constant dense<0.000000e+00> : vector<8x128xf32>
    %13 = tpu.matmul %11, %12, %cst_9 {dimension_numbers = #tpu.dot_dimension_numbers<[1], [0], [0], [1], [0, 0, 1, 1], [], []>} : vector<8x128xbf16>, vector<128x128xbf16>, vector<8x128xf32> -> vector<8x128xf32>
    %c0_10 = arith.constant 0 : index
    %c0_11 = arith.constant 0 : index
    %14 = vector.load %arg5[%c0_10, %c0_11] : memref<1x128xf32, #tpu.memory_space<vmem>>, vector<1x128xf32>
    %15 = vector.broadcast %14 : vector<1x128xf32> to vector<8x128xf32>
    %16 = arith.addf %13, %15 : vector<8x128xf32>
    %c0_12 = arith.constant 0 : index
    %c0_13 = arith.constant 0 : index
    %17 = vector.load %arg6[%c0_12, %c0_13] : memref<8x128xf32, #tpu.memory_space<vmem>>, vector<8x128xf32>
    tpu.vector_store %arg6[%c0_12, %c0_13], %16 {strides = array<i32>} : memref<8x128xf32, #tpu.memory_space<vmem>>, vector<8x128xf32>,
    return
  }
  func.func @transform_0(%arg0: i32) -> (i32, i32) {
    %c0_i32 = arith.constant 0 : i32
    %c0_i32_0 = arith.constant 0 : i32
    return %arg0, %c0_i32 : i32, i32
  }
  func.func @transform_1(%arg0: i32) -> (i32, i32) {
    %c0_i32 = arith.constant 0 : i32
    %c0_i32_0 = arith.constant 0 : i32
    %c0_i32_1 = arith.constant 0 : i32
    return %c0_i32, %c0_i32_0 : i32, i32
  }
  func.func @transform_2(%arg0: i32) -> (i32, i32) {
    %c0_i32 = arith.constant 0 : i32
    %c0_i32_0 = arith.constant 0 : i32
    %c0_i32_1 = arith.constant 0 : i32
    return %c0_i32, %c0_i32_0 : i32, i32
  }
  func.func @transform_3(%arg0: i32) -> (i32, i32) {
    %c0_i32 = arith.constant 0 : i32
    %c0_i32_0 = arith.constant 0 : i32
    %c0_i32_1 = arith.constant 0 : i32
    return %c0_i32, %c0_i32_0 : i32, i32
  }
  func.func @transform_4(%arg0: i32) -> (i32, i32) {
    %c0_i32 = arith.constant 0 : i32
    %c0_i32_0 = arith.constant 0 : i32
    %c0_i32_1 = arith.constant 0 : i32
    return %c0_i32, %c0_i32_0 : i32, i32
  }
  func.func @transform_5(%arg0: i32) -> (i32, i32) {
    %c0_i32 = arith.constant 0 : i32
    %c0_i32_0 = arith.constant 0 : i32
    return %arg0, %c0_i32 : i32, i32
  }
}

</mosaic_0001>

<bundles_post_ra>
// kernel: tpu_custom_call.1
= control target key start
LH: loop header
LB: loop body
LE: loop exit
PB: predicated region body
PF: predicated region fallthrough
CT: control target
= control target key end

     0   :  { %10 = vsyncpa [#allocation3], 0  ;;  %s524_s0 = inlined_call_operand.hbm [shape: bf16[8,32], index: 0, kind: input, shape index: {}]   ;;  %s525_s1 = inlined_call_operand.hbm [shape: bf16[32,128], index: 1, kind: input, shape index: {}]   ;;  %s526_s2 = inlined_call_operand.vmem [shape: f32[1,128], index: 2, kind: input, shape index: {}]   ;;  %s527_s3 = inlined_call_operand.hbm [shape: bf16[128,128], index: 3, kind: input, shape index: {}]   ;;  %s528_s4 = inlined_call_operand.vmem [shape: f32[1,128], index: 4, kind: input, shape index: {}]   ;;  %s529_s5 = inlined_call_operand.hbm [shape: f32[8,128], index: 5, kind: output, shape index: {}]  }
   0x1   :  { %11 = vsyncpa [#allocation6], 0 }
   0x2   :  { %12 = vsyncpa [#allocation4], 0  ;;  %s426_s18 = smov [#allocation5]   ;;  %s332_s22 = scalar_lea.hbm %s525_s1, 256 }
   0x3   :  { %s28_s19 = sshll.u32 %s426_s18, 4  ;;  %p333_p0 = scmp.ne.s32.totalorder %s525_s1, %s332_s22  ;;  %s29_s19 = int_to_ptr.vmem [resolvable:$true] %s28_s19 }
   0x4   :  { %p336_p1 = scmp.lt.u32.totalorder %s332_s22, %s525_s1 }
   0x6   :  { %p338_p2 = pnand %p336_p1, %p333_p0 }
   0x8   :  { %341 = shalt.err (!%p338_p2)
}
   0x9   :  { %s342_s27 = scalar_lea.vmem %s29_s19, 256  ;;  %p347_p4 = scmp.lt.s32.totalorder %s29_s19, %s29_s19 }
   0xa   :  { %p343_p3 = scmp.ne.s32.totalorder %s29_s19, %s342_s27  ;;  %p348_p5 = scmp.lt.s32.totalorder %s342_s27, %s342_s27 }
   0xc   :  { %p349_p6 = por %p348_p5, %p347_p4 }
   0xe   :  { %p350_p7 = pnand %p349_p6, %p343_p3 }
  0x10   :  { %353 = shalt.err (!%p350_p7)
}
  0x11   :  { %s427_s28 = smov 64   ;;  %s428_s29 = smov 4  }
  0x12   :  { %34 = dma.hbm_to_vmem [thread:$0]  %s525_s1, 256, %s29_s19, [#allocation6], %s427_s28, %s427_s28, %s428_s29  }
  0x13   :  { %s429_s7 = smov [#allocation2]   ;;  %s430_s9 = smov [#allocation7]  }
  0x14   :  { %s19_s8 = sshll.u32 %s429_s7, 4  ;;  %s42_s10 = sshll.u32 %s430_s9, 4  ;;  %s20_s8 = int_to_ptr.vmem [resolvable:$true] %s19_s8  ;;  %s43_s10 = int_to_ptr.vmem [resolvable:$true] %s42_s10 }
  0x15   :  { %s354_s13 = scalar_lea.hbm %s524_s0, 64 }
  0x16   :  { %p355_p8 = scmp.ne.s32.totalorder %s524_s0, %s354_s13  ;;  %p358_p9 = scmp.lt.u32.totalorder %s354_s13, %s524_s0 }
  0x18   :  { %p360_p10 = pnand %p358_p9, %p355_p8 }
  0x1a   :  { %363 = shalt.err (!%p360_p10)
}
  0x1b   :  { %s364_s1 = scalar_lea.vmem %s20_s8, 64  ;;  %p369_p12 = scmp.lt.s32.totalorder %s20_s8, %s20_s8 }
  0x1c   :  { %p365_p11 = scmp.ne.s32.totalorder %s20_s8, %s364_s1  ;;  %p370_p13 = scmp.lt.s32.totalorder %s364_s1, %s364_s1 }
  0x1e   :  { %p371_p0 = por %p370_p13, %p369_p12 }
  0x20   :  { %p372_p1 = pnand %p371_p0, %p365_p11 }
  0x22   :  { %375 = shalt.err (!%p372_p1)
}
  0x23   :  { %22 = dma.hbm_to_vmem [thread:$0]  %s524_s0, 64, %s20_s8, [#allocation3]  }
  0x24   :  { %s376_s22 = scalar_lea.hbm %s527_s3, 1024 }
  0x25   :  { %p377_p2 = scmp.ne.s32.totalorder %s527_s3, %s376_s22  ;;  %p380_p3 = scmp.lt.u32.totalorder %s376_s22, %s527_s3 }
  0x27   :  { %p382_p4 = pnand %p380_p3, %p377_p2 }
  0x29   :  { %385 = shalt.err (!%p382_p4)
}
  0x2a   :  { %s386_s27 = scalar_lea.vmem %s43_s10, 1024  ;;  %p391_p6 = scmp.lt.s32.totalorder %s43_s10, %s43_s10 }
  0x2b   :  { %p387_p5 = scmp.ne.s32.totalorder %s43_s10, %s386_s27  ;;  %p392_p7 = scmp.lt.s32.totalorder %s386_s27, %s386_s27 }
  0x2d   :  { %p393_p8 = por %p392_p7, %p391_p6 }
  0x2f   :  { %p394_p9 = pnand %p393_p8, %p387_p5 }
  0x31   :  { %397 = shalt.err (!%p394_p9)
}
  0x32   :  { %48 = dma.hbm_to_vmem [thread:$0]  %s527_s3, 1024, %s43_s10, [#allocation6], %s427_s28, %s427_s28, %s428_s29  }
  0x33   :  { %420 = dma.done.wait [#allocation3], 64  }
  0x34   :  { %421 = vsyncadd [#allocation3], 4294967232 }
  0x35   :  { %422 = dma.done.wait [#allocation6], 1280  }
  0x36   :  { %423 = vsyncadd [#allocation6], 4294966016  ;;  %v431_v0 = vmov 0.0   ;;  %vm432_vm0 = vmmov 0   ;;  %v322_v1 = vld [vmem:[#allocation5] sm:$0xff]   ;;  %v323_v2 = vld [vmem:[#allocation5 + $0x8] sm:$0xff]  }
  0x37   :  { %286 = vmatprep.subr.bf16.mxu0 %v431_v0  ;;  %290 = vmatprep.mubr.msk.bf16.mxu0 %vm432_vm0, %v431_v0  ;;  %v324_v3 = vld [vmem:[#allocation7] sm:$0xff]   ;;  %vm85_vm1 = vcmask 261120   ;;  %v325_v4 = vld [vmem:[#allocation7 + $0x8] sm:$0xff]   ;;  %v326_v6 = vld [vmem:[#allocation7 + $0x10] sm:$0xff]   ;;  %s433_s7 = smov [#allocation8]  }
  0x38   :  { %294 = vmatprep.subr.bf16.mxu1 %v431_v0  ;;  %310 = vmatprep.mubr.msk.bf16.mxu1 %vm432_vm0, %v431_v0  ;;  %v61_v5 = vld [vmem:[#allocation2] sm:$0xf]  ;;  %v327_v7 = vld [vmem:[#allocation7 + $0x18] sm:$0xff]   ;;  %v328_v8 = vld [vmem:[#allocation7 + $0x20] sm:$0xff]   ;;  %s251_s8 = sshll.u32 %s433_s7, 4  ;;  %s252_s8 = int_to_ptr.vmem [resolvable:$true] %s251_s8 }
  0x39   :  { %287 = vmatpush3.bf16.msra.mxu0 %v322_v1  ;;  %295 = vmatpush3.bf16.msra.mxu1 %v324_v3  ;;  %v329_v9 = vld [vmem:[#allocation7 + $0x28] sm:$0xff]   ;;  %v330_v10 = vld [vmem:[#allocation7 + $0x30] sm:$0xff]   ;;  %v331_v11 = vld [vmem:[#allocation7 + $0x38] sm:$0xff]   ;;  %p403_p11 = scmp.lt.s32.totalorder %s252_s8, %s252_s8 }
  0x3a   :  { %288 = vmatprep.subr.bf16.mxu0 %v431_v0  ;;  %296 = vmatprep.subr.bf16.mxu1 %v431_v0  ;;  %v261_v12 = vld [vmem:[%s526_s2] ss:$0 sm:$0xff]  ;;  %s398_s2 = scalar_lea.vmem %s252_s8, 128 }
  0x3b   :  { %v265_v21 = vld [vmem:[%s528_s4] ss:$0 sm:$0xff]  ;;  %p399_p10 = scmp.ne.s32.totalorder %s252_s8, %s398_s2  ;;  %p404_p12 = scmp.lt.s32.totalorder %s398_s2, %s398_s2 }
  0x3d   :  { %289 = vmatpush3.bf16.msra.mxu0 %v323_v2  ;;  %297 = vmatpush3.bf16.msra.mxu1 %v325_v4  ;;  %p405_p13 = por %p404_p12, %p403_p11 }
  0x3e   :  { %298 = vmatprep.subr.bf16.mxu1 %v431_v0 }
  0x3f   :  { %p406_p0 = pnand %p405_p13, %p399_p10 }
  0x40   :  { %291 = vmatmul.mubr.msk.bf16.vlgmr.msra.gmra.mrb[0].mxu0 %vm85_vm1, %v61_v5 }
  0x41   :  { %299 = vmatpush3.bf16.msra.mxu1 %v326_v6 }
  0x42   :  { %300 = vmatprep.subr.bf16.mxu1 %v431_v0 }
  0x45   :  { %301 = vmatpush3.bf16.msra.mxu1 %v327_v7 }
  0x46   :  { %302 = vmatprep.subr.bf16.mxu1 %v431_v0 }
  0x49   :  { %303 = vmatpush3.bf16.msra.mxu1 %v328_v8 }
  0x4a   :  { %304 = vmatprep.subr.bf16.mxu1 %v431_v0 }
  0x4d   :  { %305 = vmatpush3.bf16.msra.mxu1 %v329_v9 }
  0x4e   :  { %306 = vmatprep.subr.bf16.mxu1 %v431_v0 }
  0x51   :  { %307 = vmatpush3.bf16.msra.mxu1 %v330_v10 }
  0x52   :  { %308 = vmatprep.subr.bf16.mxu1 %v431_v0 }
  0x55   :  { %309 = vmatpush3.bf16.msra.mxu1 %v331_v11 }
 0x113   :  { %v123_v13 = vpop.f32.mrb[0].mxu0 }
 0x114   :  { %v124_v14 = vadd.f32 %v261_v12, %v123_v13  ;;  %v292_v15 = vpop.f32.mrb[1].mxu0 }
 0x115   :  { %v126_v16 = vpop.f32.mrb[2].mxu0 }
 0x116   :  { %vm129_vm2 = vcmp.ge.f32.partialorder %v124_v14, 0.0  ;;  %v130_v17 = vmul.f32 0.2, %v124_v14  ;;  %v293_v18 = vpop.f32.mrb[3].mxu0 }
 0x118   :  { %v131_v19 = vsel %vm129_vm2, %v124_v14, %v130_v17 }
 0x119   :  { %v132_v20 = vpack.c.bf16 %v131_v19, %v131_v19 }
 0x11b   :  { %311 = vmatmul.mubr.bf16.vlgmr.msra.gmra.mrb[0].mxu1 %v132_v20 }
 0x1ee   :  { %v238_v22 = vpop.f32.mrb[0].mxu1 }
 0x1ef   :  { %v239_v23 = vadd.f32 %v265_v21, %v238_v22  ;;  %v312_v24 = vpop.f32.mrb[1].mxu1 }
 0x1f0   :  { %v241_v25 = vpop.f32.mrb[2].mxu1 }
 0x1f1   :  { %244 = vst [vmem:[#allocation8] sm:$0xff] %v239_v23  ;;  %v313_v26 = vpop.f32.mrb[3].mxu1 }
 0x1f2   :  { %409 = shalt.err (!%p406_p0)
}
 0x1f3   :  { %s410_s4 = scalar_lea.hbm %s529_s5, 128 }
 0x1f4   :  { %p411_p1 = scmp.ne.s32.totalorder %s529_s5, %s410_s4  ;;  %p414_p2 = scmp.lt.u32.totalorder %s410_s4, %s529_s5 }
 0x1f6   :  { %p416_p3 = pnand %p414_p2, %p411_p1 }
 0x1f8   :  { %419 = shalt.err (!%p416_p3)
}
 0x1f9   :  { %254 = dma.vmem_to_hbm [thread:$0]  %s252_s8, 128, %s529_s5, [#allocation4]  }
 0x1fa   :  { %424 = dma.done.wait [#allocation4], 128  }
 0x1fb   :  { %425 = vsyncadd [#allocation4], 4294967168 }
 0x1fc   :  { %258 = vsyncpa [#allocation3], 1 }
 0x1fd   :  { %259 = vsyncpa [#allocation6], 1 }
 0x1fe   :  { %260 = vsyncpa [#allocation4], 1 }

</bundles_post_ra>
